<compile_context>
chip_gen: v5e
topology: v5e:2x2
jax: 0.10.0
libtpu: 0.0.40
codegen_flags: <defaults>
</compile_context>

<pallas_src>
import functools
import math

import jax
import jax.numpy as jnp
from jax.experimental import pallas as pl
from jax.experimental.pallas import tpu as pltpu

_MIB = 1024 * 1024


def _divisors(n):
    ds = set()
    i = 1
    while i * i <= n:
        if n % i == 0:
            ds.add(i)
            ds.add(n // i)
        i += 1
    return sorted(ds)


def _vmem_budget():
    """Generation-aware VMEM targets (v5e/v6e: 128 MiB physical, v7x: 64 MiB)."""
    try:
        cap = int(pltpu.get_tpu_info().vmem_capacity_bytes)
    except Exception:
        cap = 64 * _MIB  # conservative default if the query is unavailable
    budget = min(48 * _MIB, cap // 2)        # block-sizing target
    hard_cap = max(budget, cap - 16 * _MIB)  # absolute scoped-VMEM ceiling
    return budget, hard_cap


def _vmem_limit(footprint, hard_cap):
    return int(min(hard_cap, max(32 * _MIB, footprint + 2 * _MIB)))


def _seam_sublane_kernel(c1, x1_ref, x2_ref, o_ref):
    # Seam on the sublane (second-minor) axis; both stores are lane-dense.
    o_ref[:, :c1, :] = x1_ref[...]
    o_ref[:, c1:, :] = x2_ref[...]


def _seam_lane_kernel(w1, x1_ref, x2_ref, o_ref):
    # Seam on the lane (minor) axis; unmasked when w1 % 128 == 0.
    o_ref[:, :w1] = x1_ref[...]
    o_ref[:, w1:] = x2_ref[...]


def _concat_3d(x1, x2, lead, c1, c2, tail, out_dtype, dsize, budget, hard_cap):
    """Path A: (lead, C, tail) layout, concat seam on sublanes."""
    if tail % 128 != 0:
        return None
    c_total = c1 + c2
    a = x1.reshape(lead, c1, tail)
    b = x2.reshape(lead, c2, tail)

    # Double-buffered inputs + output: ~ 4 * c_total * TL * tile_t * dsize bytes.
    per_col = 4 * c_total * dsize

    # Lane tile: largest 128-multiple divisor of tail that fits the budget at TL=1.
    max_t = budget // per_col
    tile_t = 128
    for d in _divisors(tail // 128):
        if d * 128 <= max_t:
            tile_t = max(tile_t, d * 128)

    # Lead tile: largest divisor of lead keeping the footprint under budget.
    max_l = max(1, budget // (per_col * tile_t))
    lead_divs = _divisors(lead)
    tl = 1
    for d in lead_divs:
        if d <= max_l:
            tl = max(tl, d)

    if per_col * tl * tile_t > hard_cap:
        return None  # even the minimal legal block cannot fit

    # Megacore: keep >=2 grid steps when possible (v7x has 2 TensorCores).
    if (lead // tl) * (tail // tile_t) == 1:
        if tl > 1:
            tl = max(d for d in lead_divs if d < tl)
        elif tile_t % 256 == 0:
            tile_t //= 2

    footprint = per_col * tl * tile_t
    grid = (lead // tl, tail // tile_t)

    return pl.pallas_call(
        functools.partial(_seam_sublane_kernel, c1),
        out_shape=jax.ShapeDtypeStruct((lead, c_total, tail), out_dtype),
        grid=grid,
        in_specs=[
            pl.BlockSpec((tl, c1, tile_t), lambda n, j: (n, 0, j)),
            pl.BlockSpec((tl, c2, tile_t), lambda n, j: (n, 0, j)),
        ],
        out_specs=pl.BlockSpec((tl, c_total, tile_t), lambda n, j: (n, 0, j)),
        compiler_params=pltpu.CompilerParams(
            dimension_semantics=("parallel", "parallel"),
            vmem_limit_bytes=_vmem_limit(footprint, hard_cap),
        ),
    )(a, b)


def _concat_flat(x1, x2, lead, c1, c2, tail, out_dtype, dsize, budget, hard_cap):
    """Path B: (lead, C*tail) layout, concat seam on lanes."""
    w1, w2 = c1 * tail, c2 * tail
    row = w1 + w2
    a = x1.reshape(lead, w1)
    b = x2.reshape(lead, w2)

    # Legal sublane tiles: divide `lead` and are a multiple of 8 (or full lead).
    cands = [d for d in _divisors(lead) if d % 8 == 0 or d == lead]
    per_row = 4 * row * dsize  # double-buffered inputs + output per lead row
    fits = [d for d in cands if d * per_row <= budget]
    if fits:
        tl = max(fits)
    else:
        tl = min(cands)
        if tl * per_row > hard_cap:
            return None  # even the minimal legal block cannot fit

    # Megacore: keep >=2 grid steps when possible (v7x has 2 TensorCores).
    if lead // tl == 1:
        smaller = [d for d in cands if d < tl]
        if smaller:
            tl = max(smaller)

    footprint = tl * per_row
    grid = (lead // tl,)

    return pl.pallas_call(
        functools.partial(_seam_lane_kernel, w1),
        out_shape=jax.ShapeDtypeStruct((lead, row), out_dtype),
        grid=grid,
        in_specs=[
            pl.BlockSpec((tl, w1), lambda n: (n, 0)),
            pl.BlockSpec((tl, w2), lambda n: (n, 0)),
        ],
        out_specs=pl.BlockSpec((tl, row), lambda n: (n, 0)),
        compiler_params=pltpu.CompilerParams(
            dimension_semantics=("parallel",),
            vmem_limit_bytes=_vmem_limit(footprint, hard_cap),
        ),
    )(a, b)


def concatenate(x1, x2, axis):
    """torch.cat((x1, x2), axis) semantics for JAX arrays via Pallas TPU kernels."""
    assert x1.ndim == x2.ndim and x1.ndim >= 1, "inputs must have the same rank"
    axis = axis % x1.ndim
    for d in range(x1.ndim):
        if d != axis:
            assert x1.shape[d] == x2.shape[d], f"dim {d} mismatch"

    # torch.cat promotes mixed dtypes; jnp.promote_types is close enough here
    # (values are a pure copy, so no numerical differences).
    out_dtype = jnp.promote_types(x1.dtype, x2.dtype)
    x1 = x1.astype(out_dtype)
    x2 = x2.astype(out_dtype)

    c1, c2 = x1.shape[axis], x2.shape[axis]
    out_shape = x1.shape[:axis] + (c1 + c2,) + x1.shape[axis + 1:]
    lead = math.prod(x1.shape[:axis])
    tail = math.prod(x1.shape[axis + 1:])

    # Degenerate / empty cases: avoid 0-sized Pallas blocks.
    if c1 == 0:
        return x2.reshape(out_shape)
    if c2 == 0:
        return x1.reshape(out_shape)
    if lead == 0 or tail == 0:
        return jnp.zeros(out_shape, out_dtype)

    dsize = jnp.dtype(out_dtype).itemsize
    pack = 32 // dsize if dsize in (1, 2, 4) else 8  # sublane pack: f32=8, bf16=16, i8=32
    budget, hard_cap = _vmem_budget()

    # Prefer the sublane-seam path only when it is fully aligned (no masked
    # stores); otherwise the lane-seam (flat) path is lane-dense and cheaper.
    prefer_3d = (tail % 128 == 0) and (c1 % pack == 0)
    paths = (_concat_3d, _concat_flat) if prefer_3d else (_concat_flat, _concat_3d)

    out3 = None
    for fn in paths:
        out3 = fn(x1, x2, lead, c1, c2, tail, out_dtype, dsize, budget, hard_cap)
        if out3 is not None:
            break

    if out3 is None:
        # Pathological shape: a single legal block would not fit in VMEM.
        # TODO(synk): manual HBM->HBM DMA path instead of the XLA fallback.
        return jnp.concatenate((x1, x2), axis=axis)

    return out3.reshape(out_shape)


class Concatenate:
    """Mirror of the PyTorch module: stores axis, concatenates on call."""

    def __init__(self, axis, *args):
        self.axis = axis

    def __call__(self, x1, x2):
        return concatenate(x1, x2, self.axis)


if __name__ == "__main__":
    key = jax.random.PRNGKey(0)
    k1, k2, k3, k4, k5, k6, k7, k8 = jax.random.split(key, 8)

    # 1) NCHW, channel concat with unequal (sublane-misaligned) channels
    #    -> exercises the lane-seam (flat) path.
    x1 = jax.random.normal(k1, (2, 4, 16, 16), dtype=jnp.float32)
    x2 = jax.random.normal(k2, (2, 6, 16, 16), dtype=jnp.float32)
    out = jax.block_until_ready(Concatenate(axis=1)(x1, x2))
    ref = jnp.concatenate((x1, x2), axis=1)
    assert out.shape == ref.shape and jnp.array_equal(out, ref), "axis=1 mismatch"

    # 2) Sublane-aligned channels, 128-aligned tail -> sublane-seam path.
    a1 = jax.random.normal(k3, (2, 8, 16, 16), dtype=jnp.float32)
    a2 = jax.random.normal(k4, (2, 8, 16, 16), dtype=jnp.float32)
    out2 = jax.block_until_ready(Concatenate(axis=1)(a1, a2))
    ref2 = jnp.concatenate((a1, a2), axis=1)
    assert out2.shape == ref2.shape and jnp.array_equal(out2, ref2), "axis=1 aligned mismatch"

    # 3) Unaligned mid-axis concat (tail not 128-aligned) -> flat path.
    y1 = jax.random.normal(k5, (2, 4, 16, 16), dtype=jnp.float32)
    y2 = jax.random.normal(k6, (2, 4, 8, 16), dtype=jnp.float32)
    out3 = jax.block_until_ready(Concatenate(axis=2)(y1, y2))
    ref3 = jnp.concatenate((y1, y2), axis=2)
    assert out3.shape == ref3.shape and jnp.array_equal(out3, ref3), "axis=2 mismatch"

    # 4) Last-axis (feature) concat, tail == 1 -> flat path, seam on lanes.
    z1 = jax.random.normal(k7, (2, 8, 32), dtype=jnp.float32)
    z2 = jax.random.normal(k8, (2, 8, 16), dtype=jnp.float32)
    out4 = jax.block_until_ready(Concatenate(axis=-1)(z1, z2))
    ref4 = jnp.concatenate((z1, z2), axis=-1)
    assert out4.shape == ref4.shape and jnp.array_equal(out4, ref4), "axis=-1 mismatch"

    print("KERNEL_OK")
</pallas_src>

<mosaic_0001>
module attributes {stable_mosaic.version = 11 : i64} {
  func.func @_seam_lane_kernel(%arg0: i32, %arg1: memref<2x1024xf32, #tpu.memory_space<vmem>>, %arg2: memref<2x1536xf32, #tpu.memory_space<vmem>>, %arg3: memref<2x2560xf32, #tpu.memory_space<vmem>>) attributes {dimension_semantics = [#tpu.dimension_semantics<parallel>], iteration_bounds = array<i64: 1>, scalar_prefetch = 0 : i64, scratch_operands = 0 : i64, tpu.core_type = #tpu.core_type<tc>, window_params = [{transform_indices = @transform_0, window_bounds = array<i64: 2, 1024>}, {transform_indices = @transform_1, window_bounds = array<i64: 2, 1536>}, {transform_indices = @transform_2, window_bounds = array<i64: 2, 2560>}]} {
    %c0 = arith.constant 0 : index
    %c0_0 = arith.constant 0 : index
    %0 = vector.load %arg1[%c0, %c0_0] : memref<2x1024xf32, #tpu.memory_space<vmem>>, vector<2x1024xf32>
    %c0_1 = arith.constant 0 : index
    %c0_2 = arith.constant 0 : index
    %1 = vector.load %arg3[%c0_1, %c0_2] : memref<2x2560xf32, #tpu.memory_space<vmem>>, vector<2x1024xf32>
    tpu.vector_store %arg3[%c0_1, %c0_2], %0 {strides = array<i32>} : memref<2x2560xf32, #tpu.memory_space<vmem>>, vector<2x1024xf32>,
    %c0_3 = arith.constant 0 : index
    %c0_4 = arith.constant 0 : index
    %2 = vector.load %arg2[%c0_3, %c0_4] : memref<2x1536xf32, #tpu.memory_space<vmem>>, vector<2x1536xf32>
    %c0_5 = arith.constant 0 : index
    %c1024 = arith.constant 1024 : index
    %3 = vector.load %arg3[%c0_5, %c1024] : memref<2x2560xf32, #tpu.memory_space<vmem>>, vector<2x1536xf32>
    tpu.vector_store %arg3[%c0_5, %c1024], %2 {strides = array<i32>} : memref<2x2560xf32, #tpu.memory_space<vmem>>, vector<2x1536xf32>,
    return
  }
  func.func @transform_0(%arg0: i32) -> (i32, i32) {
    %c0_i32 = arith.constant 0 : i32
    %c0_i32_0 = arith.constant 0 : i32
    return %arg0, %c0_i32 : i32, i32
  }
  func.func @transform_1(%arg0: i32) -> (i32, i32) {
    %c0_i32 = arith.constant 0 : i32
    %c0_i32_0 = arith.constant 0 : i32
    return %arg0, %c0_i32 : i32, i32
  }
  func.func @transform_2(%arg0: i32) -> (i32, i32) {
    %c0_i32 = arith.constant 0 : i32
    %c0_i32_0 = arith.constant 0 : i32
    return %arg0, %c0_i32 : i32, i32
  }
}

</mosaic_0001>

<bundles_post_ra>
// kernel: tpu_custom_call.1
= control target key start
LH: loop header
LB: loop body
LE: loop exit
PB: predicated region body
PF: predicated region fallthrough
CT: control target
= control target key end

     0   :  { %7 = vsyncpa [#allocation3], 0  ;;  %s176_s0 = inlined_call_operand.hbm [shape: f32[2,1024], index: 0, kind: input, shape index: {}]   ;;  %s177_s1 = inlined_call_operand.hbm [shape: f32[2,1536], index: 1, kind: input, shape index: {}]   ;;  %s178_s2 = inlined_call_operand.hbm [shape: f32[2,2560], index: 2, kind: output, shape index: {}]  }
   0x1   :  { %8 = vsyncpa [#allocation6], 0 }
   0x2   :  { %9 = vsyncpa [#allocation4], 0  ;;  %s15_s11 = sshll.u32 %s176_s0, 4  ;;  %s149_s12 = smov [#allocation2]   ;;  %s16_s11 = int_to_ptr.hbm [resolvable:$true] %s15_s11 }
   0x3   :  { %s17_s13 = sshll.u32 %s149_s12, 4  ;;  %s26_s16 = sshll.u32 %s177_s1, 4  ;;  %s18_s13 = int_to_ptr.vmem [resolvable:$true] %s17_s13  ;;  %s27_s16 = int_to_ptr.hbm [resolvable:$true] %s26_s16 }
   0x4   :  { %20 = dma.hbm_to_vmem [thread:$0]  %s16_s11, 256, %s18_s13, [#allocation3]  }
   0x5   :  { %s150_s17 = smov [#allocation5]  }
   0x6   :  { %s28_s18 = sshll.u32 %s150_s17, 4  ;;  %s29_s18 = int_to_ptr.vmem [resolvable:$true] %s28_s18 }
   0x7   :  { %31 = dma.hbm_to_vmem [thread:$0]  %s27_s16, 384, %s29_s18, [#allocation6]  }
   0x8   :  { %143 = dma.done.wait [#allocation3], 256  }
   0x9   :  { %144 = vsyncadd [#allocation3], 4294967040 }
   0xa   :  { %145 = dma.done.wait [#allocation6], 384  }
   0xb   :  { %146 = vsyncadd [#allocation6], 4294966912  ;;  %v40_v0 = vld [vmem:[#allocation2] sm:$0xff]  ;;  %v41_v1 = vld [vmem:[#allocation2 + $0x8] sm:$0xff]  ;;  %s151_s0 = smov [#allocation7]   ;;  %s57_s22 = sshll.u32 %s178_s2, 4  ;;  %s58_s22 = int_to_ptr.hbm [resolvable:$true] %s57_s22 }
   0xc   :  { %v44_v2 = vld [vmem:[#allocation5] sm:$0xff]  ;;  %s55_s19 = sshll.u32 %s151_s0, 4  ;;  %42 = vst [vmem:[#allocation7] sm:$0xff] %v40_v0  ;;  %v45_v3 = vld [vmem:[#allocation5 + $0x8] sm:$0xff]  ;;  %v46_v4 = vld [vmem:[#allocation5 + $0x10] sm:$0xff]  ;;  %s56_s19 = int_to_ptr.vmem [resolvable:$true] %s55_s19 }
   0xd   :  { %43 = vst [vmem:[#allocation7 + $0x8] sm:$0xff] %v41_v1 }
   0xe   :  { %47 = vst [vmem:[#allocation7 + $0x10] sm:$0xff] %v44_v2 }
   0xf   :  { %48 = vst [vmem:[#allocation7 + $0x18] sm:$0xff] %v45_v3 }
  0x10   :  { %49 = vst [vmem:[#allocation7 + $0x20] sm:$0xff] %v46_v4 }
  0x11   :  { %60 = dma.vmem_to_hbm [thread:$0]  %s56_s19, 640, %s58_s22, [#allocation4]  }
  0x12   :  { %147 = dma.done.wait [#allocation4], 640  }
  0x13   :  { %148 = vsyncadd [#allocation4], 4294966656 }
  0x14   :  { %65 = vsyncpa [#allocation3], 1 }
  0x15   :  { %66 = vsyncpa [#allocation6], 1 }
  0x16   :  { %67 = vsyncpa [#allocation4], 1 }

</bundles_post_ra>
